<compile_context>
chip_gen: v7x
topology: tpu7x:2x2x1
jax: 0.10.0
libtpu: 0.0.40
codegen_flags: <defaults>
</compile_context>

<pallas_src>
import numpy as np
import jax
import jax.numpy as jnp
from jax import lax
from jax.experimental import pallas as pl
from jax.experimental.pallas import tpu as pltpu


def _round_up(a, b):
    return ((a + b - 1) // b) * b


# ---------------------------------------------------------------------------
# Pass 1: conv-as-matmul (bf16 in, f32 accumulate over K tiles) + per-M-tile
#         BN partial sums taken from the f32 accumulator on the last K step.
# ---------------------------------------------------------------------------
def _conv_stats_kernel(p_ref, w_ref, y_ref, stat_ref, acc_ref):
    # p_ref:    (tm, tk)   bf16 im2col patch tile
    # w_ref:    (tk, Cp)   bf16 weight tile
    # y_ref:    (tm, Cp)   bf16 raw conv output tile (written on last K step)
    # stat_ref: (1, 2, Cp) f32 — row 0 = sum(y), row 1 = sum(y*y)
    # acc_ref:  (tm, Cp)   f32 accumulator scratch
    k = pl.program_id(1)

    @pl.when(k == 0)
    def _():
        acc_ref[...] = jnp.zeros_like(acc_ref)

    acc_ref[...] += jnp.dot(p_ref[...], w_ref[...],
                            preferred_element_type=jnp.float32)

    @pl.when(k == pl.num_programs(1) - 1)
    def _():
        y = acc_ref[...]
        y_ref[...] = y.astype(y_ref.dtype)
        s = jnp.sum(y, axis=0, keepdims=True)           # (1, Cp)
        sq = jnp.sum(y * y, axis=0, keepdims=True)      # (1, Cp)
        stat_ref[...] = jnp.concatenate([s, sq], axis=0)[None, :, :]


# ---------------------------------------------------------------------------
# Pass 2: fused BatchNorm affine (scale/shift precomputed) + LeakyReLU(0.2).
# Epilogue math in f32 (v5e has no bf16 VPU/EUP); store bf16.
# ---------------------------------------------------------------------------
def _bn_act_kernel(y_ref, scale_ref, shift_ref, o_ref):
    y = y_ref[...].astype(jnp.float32) * scale_ref[...] + shift_ref[...]
    o_ref[...] = jnp.where(y >= 0.0, y, 0.2 * y).astype(o_ref.dtype)


def _pick_vmem_limit(needed_bytes):
    """Shape-aware VMEM budget, clamped to the chip's physical VMEM."""
    phys = 64 * 1024 * 1024            # conservative fallback (v7x per-TC VMEM)
    try:
        info = pltpu.get_tpu_info()
        phys = int(getattr(info, "vmem_capacity_bytes", phys))
    except Exception:
        pass
    limit = max(needed_bytes + (8 << 20), 16 << 20)      # headroom above need
    return min(limit, max(phys - (8 << 20), 16 << 20))   # stay below physical


def downsample_conv(x_nchw, weight, bias, gamma, beta,
                    kernel=4, stride=2, padding=1, eps=1e-5):
    """Forward pass of DownSampleConv (batchnorm=True, activation=True).

    x_nchw: (N, Cin, H, W); weight: (Cout, Cin, KH, KW) (PyTorch layouts).
    `bias` is accepted for API parity but is mathematically cancelled by
    training-mode BatchNorm's mean subtraction, so it is not used.
    """
    del bias  # exactly cancelled by the BN mean subtraction (training mode)

    N, Cin, H, W = x_nchw.shape
    Cout, _, KH, KW = weight.shape
    Ho = (H + 2 * padding - KH) // stride + 1
    Wo = (W + 2 * padding - KW) // stride + 1

    # --- plain-JAX glue: pad + im2col in NHWC (channels on the lane dim) ---
    x_nhwc = jnp.transpose(x_nchw, (0, 2, 3, 1))
    xp = jnp.pad(x_nhwc, ((0, 0), (padding, padding), (padding, padding), (0, 0)))
    cols = []
    for kh in range(KH):
        for kw in range(KW):
            cols.append(xp[:, kh:kh + stride * Ho:stride,
                              kw:kw + stride * Wo:stride, :])     # (N,Ho,Wo,Cin)
    patches = jnp.concatenate(cols, axis=-1)                      # (N,Ho,Wo,Kd)

    M = N * Ho * Wo
    Kd = KH * KW * Cin
    # Channel padding: lane-dense 128 only when Cout is already >= 128; small
    # Cout keeps a full-dim (8-aligned) block — masked stores are cheaper than
    # 2-16x more bytes on a mem-bound op.
    Cp = _round_up(Cout, 128) if Cout >= 128 else _round_up(Cout, 8)

    # Row tile: big (multiple of 256) to amortize grid-step overhead; padded
    # rows are zero, contribute 0 to the stats (we divide by the true M).
    tm = min(1024, _round_up(M, 8))
    M_pad = _round_up(M, tm)
    num_m = M_pad // tm

    # K tile: split big reductions so no block set approaches v7x's 64 MiB.
    tk = Kd if Kd <= 2048 else 2048
    Kd_pad = _round_up(Kd, tk)
    num_k = Kd_pad // tk

    patches2d = patches.reshape(M, Kd).astype(jnp.bfloat16)
    patches2d = jnp.pad(patches2d, ((0, M_pad - M), (0, Kd_pad - Kd)))

    # weight reorder to (kh, kw, cin, cout) -> (Kd, Cout) matching patch order,
    # then pad (Kd -> Kd_pad, Cout -> Cp) and cast to bf16 for the MXU.
    w_mat = jnp.transpose(weight, (2, 3, 1, 0)).reshape(Kd, Cout)
    w_mat = jnp.pad(w_mat, ((0, Kd_pad - Kd), (0, Cp - Cout))).astype(jnp.bfloat16)

    gamma_p = jnp.pad(gamma.astype(jnp.float32), (0, Cp - Cout))
    beta_p = jnp.pad(beta.astype(jnp.float32), (0, Cp - Cout))

    # Shape-aware VMEM need: double-buffered blocks + f32 accumulator scratch.
    pass1_vmem = (2 * tm * tk * 2        # patch tile (bf16, 2 bufs)
                  + 2 * tk * Cp * 2      # weight tile (bf16, 2 bufs)
                  + 2 * tm * Cp * 2      # y2d out tile (bf16, 2 bufs)
                  + 2 * 2 * Cp * 4       # stats out tile (f32, 2 bufs)
                  + tm * Cp * 4)         # f32 accumulator
    pass2_vmem = 4 * tm * Cp * 2 + 4 * Cp * 4
    vmem_limit = _pick_vmem_limit(max(pass1_vmem, pass2_vmem))

    cparams1 = pltpu.CompilerParams(
        dimension_semantics=("parallel", "arbitrary"),
        vmem_limit_bytes=vmem_limit)
    cparams2 = pltpu.CompilerParams(
        dimension_semantics=("parallel",),
        vmem_limit_bytes=vmem_limit)

    # ---- pass 1: tiled matmul (f32 accumulate) + per-tile BN partial sums ----
    y2d, stats = pl.pallas_call(
        _conv_stats_kernel,
        out_shape=(
            jax.ShapeDtypeStruct((M_pad, Cp), jnp.bfloat16),
            jax.ShapeDtypeStruct((num_m, 2, Cp), jnp.float32),
        ),
        grid=(num_m, num_k),
        in_specs=[
            pl.BlockSpec((tm, tk), lambda i, k: (i, k)),
            pl.BlockSpec((tk, Cp), lambda i, k: (k, 0)),
        ],
        out_specs=(
            pl.BlockSpec((tm, Cp), lambda i, k: (i, 0)),
            pl.BlockSpec((1, 2, Cp), lambda i, k: (i, 0, 0)),
        ),
        scratch_shapes=[pltpu.VMEM((tm, Cp), jnp.float32)],
        compiler_params=cparams1,
    )(patches2d, w_mat)

    # ---- tiny finalize (plain JAX): global BN stats -> fused scale/shift ----
    stat_tot = jnp.sum(stats, axis=0)                # (2, Cp)
    mean = stat_tot[0] / M
    var = jnp.maximum(stat_tot[1] / M - mean * mean, 0.0)   # biased variance
    inv = lax.rsqrt(var + eps)
    scale = gamma_p * inv
    shift = beta_p - mean * scale
    scale_row = scale.reshape(1, Cp)
    shift_row = shift.reshape(1, Cp)

    # ---- pass 2: fused normalize + LeakyReLU; output aliases y2d in HBM ----
    out2d = pl.pallas_call(
        _bn_act_kernel,
        out_shape=jax.ShapeDtypeStruct((M_pad, Cp), jnp.bfloat16),
        grid=(num_m,),
        in_specs=[
            pl.BlockSpec((tm, Cp), lambda i: (i, 0)),
            pl.BlockSpec((1, Cp), lambda i: (0, 0)),
            pl.BlockSpec((1, Cp), lambda i: (0, 0)),
        ],
        out_specs=pl.BlockSpec((tm, Cp), lambda i: (i, 0)),
        input_output_aliases={0: 0},
        compiler_params=cparams2,
    )(y2d, scale_row, shift_row)

    # slice off row / channel padding, back to NCHW, restore caller dtype
    out = out2d[:M, :Cout].reshape(N, Ho, Wo, Cout).astype(x_nchw.dtype)
    return jnp.transpose(out, (0, 3, 1, 2))


def _reference(x_nchw, weight, bias, gamma, beta, stride=2, padding=1):
    """Pure-JAX reference mirroring the PyTorch module (train-mode BN)."""
    y = lax.conv_general_dilated(
        x_nchw.astype(jnp.float32), weight.astype(jnp.float32),
        window_strides=(stride, stride),
        padding=[(padding, padding), (padding, padding)],
        dimension_numbers=('NCHW', 'OIHW', 'NCHW'))
    y = y + bias.reshape(1, -1, 1, 1)
    mean = jnp.mean(y, axis=(0, 2, 3), keepdims=True)
    var = jnp.mean((y - mean) ** 2, axis=(0, 2, 3), keepdims=True)
    y = (y - mean) * lax.rsqrt(var + 1e-5)
    y = y * gamma.reshape(1, -1, 1, 1) + beta.reshape(1, -1, 1, 1)
    return jnp.where(y >= 0, y, 0.2 * y)


if __name__ == "__main__":
    # Small shapes consistent with the module: batch=2, Cin=4, Cout=8, 16x16.
    N, Cin, Cout, H, W = 2, 4, 8, 16, 16
    key = jax.random.PRNGKey(0)
    kx, kw, kb = jax.random.split(key, 3)

    x = jax.random.normal(kx, (N, Cin, H, W), dtype=jnp.float32)
    # Deterministic synthetic parameters (Conv2d-like fan-in scaling).
    fan_in = Cin * 4 * 4
    bound = 1.0 / np.sqrt(fan_in)
    weight = jax.random.uniform(kw, (Cout, Cin, 4, 4), jnp.float32, -bound, bound)
    bias = jax.random.uniform(kb, (Cout,), jnp.float32, -bound, bound)
    gamma = jnp.ones((Cout,), jnp.float32)   # BatchNorm2d default init
    beta = jnp.zeros((Cout,), jnp.float32)

    out = jax.block_until_ready(downsample_conv(x, weight, bias, gamma, beta))
    ref = jax.block_until_ready(_reference(x, weight, bias, gamma, beta))

    assert out.shape == (N, Cout, H // 2, W // 2), out.shape
    # bf16 MXU inputs + bf16 intermediate/output => relaxed tolerance vs f32.
    err = np.max(np.abs(np.asarray(out) - np.asarray(ref)))
    assert np.allclose(np.asarray(out), np.asarray(ref), rtol=3e-2, atol=3e-2), err
    print("KERNEL_OK")
</pallas_src>

<mosaic_0001>
module attributes {stable_mosaic.version = 11 : i64} {
  func.func @_conv_stats_kernel(%arg0: i32, %arg1: i32, %arg2: memref<128x64xbf16, #tpu.memory_space<vmem>>, %arg3: memref<64x8xbf16, #tpu.memory_space<vmem>>, %arg4: memref<128x8xbf16, #tpu.memory_space<vmem>>, %arg5: memref<1x2x8xf32, #tpu.memory_space<vmem>>, %arg6: memref<128x8xf32, #tpu.memory_space<vmem>>) attributes {dimension_semantics = [#tpu.dimension_semantics<parallel>, #tpu.dimension_semantics<arbitrary>], iteration_bounds = array<i64: 1, 1>, scalar_prefetch = 0 : i64, scratch_operands = 1 : i64, tpu.core_type = #tpu.core_type<tc>, window_params = [{transform_indices = @transform_0, window_bounds = array<i64: 128, 64>}, {transform_indices = @transform_1, window_bounds = array<i64: 64, 8>}, {transform_indices = @transform_2, window_bounds = array<i64: 128, 8>}, {transform_indices = @transform_3, window_bounds = array<i64: 1, 2, 8>}]} {
    %c0_i32 = arith.constant 0 : i32
    %0 = arith.cmpi eq, %arg1, %c0_i32 : i32
    %1 = arith.extui %0 : i1 to i32
    %c0_i32_0 = arith.constant 0 : i32
    %2 = arith.cmpi ne, %1, %c0_i32_0 : i32
    scf.if %2 {
      %cst_10 = arith.constant 0.000000e+00 : f32
      %12 = vector.broadcast %cst_10 : f32 to vector<128x8xf32>
      %c0_11 = arith.constant 0 : index
      %c0_12 = arith.constant 0 : index
      %13 = vector.load %arg6[%c0_11, %c0_12] : memref<128x8xf32, #tpu.memory_space<vmem>>, vector<128x8xf32>
      tpu.vector_store %arg6[%c0_11, %c0_12], %12 {strides = array<i32>} : memref<128x8xf32, #tpu.memory_space<vmem>>, vector<128x8xf32>,
    } else {
    }
    %c0 = arith.constant 0 : index
    %c0_1 = arith.constant 0 : index
    %3 = vector.load %arg6[%c0, %c0_1] : memref<128x8xf32, #tpu.memory_space<vmem>>, vector<128x8xf32>
    %c0_2 = arith.constant 0 : index
    %c0_3 = arith.constant 0 : index
    %4 = vector.load %arg2[%c0_2, %c0_3] : memref<128x64xbf16, #tpu.memory_space<vmem>>, vector<128x64xbf16>
    %c0_4 = arith.constant 0 : index
    %c0_5 = arith.constant 0 : index
    %5 = vector.load %arg3[%c0_4, %c0_5] : memref<64x8xbf16, #tpu.memory_space<vmem>>, vector<64x8xbf16>
    %cst = arith.constant dense<0.000000e+00> : vector<128x8xf32>
    %6 = tpu.matmul %4, %5, %cst {dimension_numbers = #tpu.dot_dimension_numbers<[1], [0], [0], [1], [0, 0, 1, 1], [], []>} : vector<128x64xbf16>, vector<64x8xbf16>, vector<128x8xf32> -> vector<128x8xf32>
    %7 = arith.addf %3, %6 : vector<128x8xf32>
    %c0_6 = arith.constant 0 : index
    %c0_7 = arith.constant 0 : index
    %8 = vector.load %arg6[%c0_6, %c0_7] : memref<128x8xf32, #tpu.memory_space<vmem>>, vector<128x8xf32>
    tpu.vector_store %arg6[%c0_6, %c0_7], %7 {strides = array<i32>} : memref<128x8xf32, #tpu.memory_space<vmem>>, vector<128x8xf32>,
    %c0_i32_8 = arith.constant 0 : i32
    %9 = arith.cmpi eq, %arg1, %c0_i32_8 : i32
    %10 = arith.extui %9 : i1 to i32
    %c0_i32_9 = arith.constant 0 : i32
    %11 = arith.cmpi ne, %10, %c0_i32_9 : i32
    scf.if %11 {
      %c0_10 = arith.constant 0 : index
      %c0_11 = arith.constant 0 : index
      %12 = vector.load %arg6[%c0_10, %c0_11] : memref<128x8xf32, #tpu.memory_space<vmem>>, vector<128x8xf32>
      %13 = arith.truncf %12 : vector<128x8xf32> to vector<128x8xbf16>
      %c0_12 = arith.constant 0 : index
      %c0_13 = arith.constant 0 : index
      %14 = vector.load %arg4[%c0_12, %c0_13] : memref<128x8xbf16, #tpu.memory_space<vmem>>, vector<128x8xbf16>
      tpu.vector_store %arg4[%c0_12, %c0_13], %13 {strides = array<i32>} : memref<128x8xbf16, #tpu.memory_space<vmem>>, vector<128x8xbf16>,
      %cst_14 = arith.constant dense<0.000000e+00> : vector<8xf32>
      %15 = vector.multi_reduction <add>, %12, %cst_14 [0] : vector<128x8xf32> to vector<8xf32>
      %16 = vector.shape_cast %15 : vector<8xf32> to vector<1x8xf32>
      %17 = arith.mulf %12, %12 : vector<128x8xf32>
      %cst_15 = arith.constant dense<0.000000e+00> : vector<8xf32>
      %18 = vector.multi_reduction <add>, %17, %cst_15 [0] : vector<128x8xf32> to vector<8xf32>
      %19 = vector.shape_cast %18 : vector<8xf32> to vector<1x8xf32>
      %20 = tpu.concatenate %16, %19 in 0 : vector<1x8xf32>, vector<1x8xf32> -> vector<2x8xf32>
      %21 = vector.shape_cast %20 : vector<2x8xf32> to vector<1x2x8xf32>
      %c0_16 = arith.constant 0 : index
      %c0_17 = arith.constant 0 : index
      %c0_18 = arith.constant 0 : index
      %22 = vector.load %arg5[%c0_16, %c0_17, %c0_18] : memref<1x2x8xf32, #tpu.memory_space<vmem>>, vector<1x2x8xf32>
      tpu.vector_store %arg5[%c0_16, %c0_17, %c0_18], %21 {strides = array<i32>} : memref<1x2x8xf32, #tpu.memory_space<vmem>>, vector<1x2x8xf32>,
    } else {
    }
    return
  }
  func.func @transform_0(%arg0: i32, %arg1: i32) -> (i32, i32) {
    %c0_i32 = arith.constant 0 : i32
    return %arg0, %arg1 : i32, i32
  }
  func.func @transform_1(%arg0: i32, %arg1: i32) -> (i32, i32) {
    %c0_i32 = arith.constant 0 : i32
    %c0_i32_0 = arith.constant 0 : i32
    return %arg1, %c0_i32 : i32, i32
  }
  func.func @transform_2(%arg0: i32, %arg1: i32) -> (i32, i32) {
    %c0_i32 = arith.constant 0 : i32
    %c0_i32_0 = arith.constant 0 : i32
    return %arg0, %c0_i32 : i32, i32
  }
  func.func @transform_3(%arg0: i32, %arg1: i32) -> (i32, i32, i32) {
    %c0_i32 = arith.constant 0 : i32
    %c0_i32_0 = arith.constant 0 : i32
    %c0_i32_1 = arith.constant 0 : i32
    return %arg0, %c0_i32, %c0_i32_0 : i32, i32, i32
  }
}

</mosaic_0001>

<bundles_post_ra>
// kernel: tpu_custom_call.1
= control target key start
LH: loop header
LB: loop body
LE: loop exit
PB: predicated region body
PF: predicated region fallthrough
CT: control target
= control target key end

     0   :  { %vm19_vm0 = vcmask 64512   ;;  %vm140_vm1 = vcmask 523264   ;;  %v641_v3 = vmov 0.0   ;;  %s917_s0 = inlined_call_operand.vmem [shape: bf16[128,64], index: 0, kind: input, shape index: {}]   ;;  %s918_s1 = inlined_call_operand.vmem [shape: bf16[64,8], index: 1, kind: input, shape index: {}]   ;;  %s919_s2 = inlined_call_operand.vmem [shape: bf16[128,8], index: 2, kind: output, shape index: {0}]   ;;  %s920_s3 = inlined_call_operand.hbm [shape: f32[1,2,8], index: 3, kind: output, shape index: {1}]  }
   0x1   :  { %v605_v0 = vld [vmem:[%s918_s1] sm:$0xff]   ;;  %v606_v1 = vld [vmem:[%s918_s1 + $0x8] sm:$0xff]   ;;  %v607_v2 = vld [vmem:[%s918_s1 + $0x10] sm:$0xff]   ;;  %22 = vst.msk [vmem:[#allocation2 + $0x10] sm:$0xff] %vm19_vm0, %v641_v3 }
   0x2   :  { %571 = vmatprep.subr.bf16.mxu0 %v605_v0  ;;  %595 = vmatprep.subr.bf16.mxu1 %v605_v0  ;;  %20 = vst.msk [vmem:[#allocation2] sm:$0xff] %vm19_vm0, %v641_v3  ;;  %21 = vst.msk [vmem:[#allocation2 + $0x8] sm:$0xff] %vm19_vm0, %v641_v3  ;;  %v609_v4 = vld [vmem:[%s917_s0] sm:$0xff]   ;;  %v608_v5 = vld [vmem:[%s918_s1 + $0x18] sm:$0xff]  }
   0x3   :  { %572 = vmatpush3.bf16.msra.mxu0 %v605_v0  ;;  %599 = vmatpush3.bf16.msra.mxu1 %v605_v0  ;;  %23 = vst.msk [vmem:[#allocation2 + $0x18] sm:$0xff] %vm19_vm0, %v641_v3  ;;  %24 = vst.msk [vmem:[#allocation2 + $0x20] sm:$0xff] %vm19_vm0, %v641_v3  ;;  %v613_v6 = vld [vmem:[%s917_s0 + $0x20] sm:$0xff]  }
   0x4   :  { %25 = vst.msk [vmem:[#allocation2 + $0x28] sm:$0xff] %vm19_vm0, %v641_v3  ;;  %26 = vst.msk [vmem:[#allocation2 + $0x30] sm:$0xff] %vm19_vm0, %v641_v3  ;;  %573 = vmatprep.subr.bf16.mxu0 %v606_v1  ;;  %596 = vmatprep.subr.bf16.mxu1 %v606_v1 }
   0x5   :  { %27 = vst.msk [vmem:[#allocation2 + $0x38] sm:$0xff] %vm19_vm0, %v641_v3  ;;  %28 = vst.msk [vmem:[#allocation2 + $0x40] sm:$0xff] %vm19_vm0, %v641_v3  ;;  %579 = vmatprep.mubr.msk.bf16.mxu0 %vm140_vm1, %v609_v4  ;;  %587 = vmatprep.mubr.msk.bf16.mxu1 %vm140_vm1, %v613_v6 }
   0x6   :  { %29 = vst.msk [vmem:[#allocation2 + $0x48] sm:$0xff] %vm19_vm0, %v641_v3  ;;  %30 = vst.msk [vmem:[#allocation2 + $0x50] sm:$0xff] %vm19_vm0, %v641_v3 }
   0x7   :  { %31 = vst.msk [vmem:[#allocation2 + $0x58] sm:$0xff] %vm19_vm0, %v641_v3  ;;  %32 = vst.msk [vmem:[#allocation2 + $0x60] sm:$0xff] %vm19_vm0, %v641_v3  ;;  %574 = vmatpush3.bf16.msra.mxu0 %v606_v1  ;;  %600 = vmatpush3.bf16.msra.mxu1 %v606_v1 }
   0x8   :  { %33 = vst.msk [vmem:[#allocation2 + $0x68] sm:$0xff] %vm19_vm0, %v641_v3  ;;  %34 = vst.msk [vmem:[#allocation2 + $0x70] sm:$0xff] %vm19_vm0, %v641_v3  ;;  %575 = vmatprep.subr.bf16.mxu0 %v607_v2  ;;  %597 = vmatprep.subr.bf16.mxu1 %v607_v2 }
   0x9   :  { %35 = vst.msk [vmem:[#allocation2 + $0x78] sm:$0xff] %vm19_vm0, %v641_v3 }
   0xb   :  { %576 = vmatpush3.bf16.msra.mxu0 %v607_v2  ;;  %601 = vmatpush3.bf16.msra.mxu1 %v607_v2 }
   0xc   :  { %577 = vmatprep.subr.bf16.mxu0 %v608_v5  ;;  %598 = vmatprep.subr.bf16.mxu1 %v608_v5 }
   0xd   :  { %9 = vsyncpa [#allocation4], 0  ;;  %v610_v7 = vld [vmem:[%s917_s0 + $0x8] sm:$0xff]   ;;  %v611_v9 = vld [vmem:[%s917_s0 + $0x10] sm:$0xff]   ;;  %vm378_vm2 = vcmask 60416   ;;  %vm485_vm3 = vcmask 1040384  }
   0xe   :  { %v614_v8 = vld [vmem:[%s917_s0 + $0x28] sm:$0xff]   ;;  %v615_v10 = vld [vmem:[%s917_s0 + $0x30] sm:$0xff]   ;;  %v612_v11 = vld [vmem:[%s917_s0 + $0x18] sm:$0xff]   ;;  %vm487_vm4 = vcmask 58368  }
   0xf   :  { %578 = vmatpush3.bf16.msra.mxu0 %v608_v5  ;;  %602 = vmatpush3.bf16.msra.mxu1 %v608_v5  ;;  %v616_v12 = vld [vmem:[%s917_s0 + $0x38] sm:$0xff]   ;;  %v38_v13 = vld [vmem:[#allocation2 + $0x10] sm:$0xff]  ;;  %v36_v15 = vld [vmem:[#allocation2] sm:$0xff] }
  0x10   :  { %v46_v14 = vld [vmem:[#allocation2 + $0x50] sm:$0xff]  ;;  %v44_v16 = vld [vmem:[#allocation2 + $0x40] sm:$0xff]  ;;  %v39_v18 = vld [vmem:[#allocation2 + $0x18] sm:$0xff] }
  0x11   :  { %v47_v20 = vld [vmem:[#allocation2 + $0x58] sm:$0xff]  ;;  %v37_v23 = vld [vmem:[#allocation2 + $0x8] sm:$0xff]  ;;  %v42_v37 = vld [vmem:[#allocation2 + $0x30] sm:$0xff] }
  0x12   :  { %580 = vmatmul.mubr.msk.bf16.vlgmr.msra.gmra.mrb[0].mxu0 %vm140_vm1, %v610_v7  ;;  %588 = vmatmul.mubr.msk.bf16.vlgmr.msra.gmra.mrb[0].mxu1 %vm140_vm1, %v614_v8  ;;  %v45_v26 = vld [vmem:[#allocation2 + $0x48] sm:$0xff]  ;;  %v50_v38 = vld [vmem:[#allocation2 + $0x70] sm:$0xff]  ;;  %v40_v39 = vld [vmem:[#allocation2 + $0x20] sm:$0xff] }
  0x13   :  { %583 = vmatprep.mubr.msk.bf16.mxu0 %vm140_vm1, %v611_v9  ;;  %591 = vmatprep.mubr.msk.bf16.mxu1 %vm140_vm1, %v615_v10  ;;  %v48_v40 = vld [vmem:[#allocation2 + $0x60] sm:$0xff]  ;;  %v43_v42 = vld [vmem:[#allocation2 + $0x38] sm:$0xff]  ;;  %v41_v46 = vld [vmem:[#allocation2 + $0x28] sm:$0xff] }
  0x14   :  { %v51_v53 = vld [vmem:[#allocation2 + $0x78] sm:$0xff]  ;;  %v49_v55 = vld [vmem:[#allocation2 + $0x68] sm:$0xff] }
  0x1a   :  { %584 = vmatmul.mubr.msk.bf16.gmra.mrb[4].mxu0 %vm140_vm1, %v612_v11  ;;  %592 = vmatmul.mubr.msk.bf16.gmra.mrb[4].mxu1 %vm140_vm1, %v616_v12 }
  0xe5   :  { %v581_v17 = vpop.f32.mrb[0].mxu0  ;;  %v589_v19 = vpop.f32.mrb[0].mxu1 }
  0xe6   :  { %v264_v21 = vadd.f32 %v581_v17, %v38_v13  ;;  %v199_v22 = vpop.f32.mrb[1].mxu0  ;;  %v272_v24 = vadd.f32 %v589_v19, %v46_v14  ;;  %v231_v25 = vpop.f32.mrb[1].mxu1 }
  0xe7   :  { %v262_v27 = vadd.f32 %v199_v22, %v36_v15  ;;  %v582_v28 = vpop.f32.mrb[2].mxu0  ;;  %v270_v29 = vadd.f32 %v231_v25, %v44_v16  ;;  %v590_v30 = vpop.f32.mrb[2].mxu1 }
  0xe8   :  { %281 = vst.msk [vmem:[#allocation2 + $0x10] sm:$0xff] %vm19_vm0, %v264_v21  ;;  %v265_v31 = vadd.f32 %v582_v28, %v39_v18  ;;  %v202_v32 = vpop.f32.mrb[3].mxu0  ;;  %289 = vst.msk [vmem:[#allocation2 + $0x50] sm:$0xff] %vm19_vm0, %v272_v24  ;;  %v273_v33 = vadd.f32 %v590_v30, %v47_v20  ;;  %v234_v34 = vpop.f32.mrb[3].mxu1 }
  0xe9   :  { %279 = vst.msk [vmem:[#allocation2] sm:$0xff] %vm19_vm0, %v262_v27  ;;  %v263_v35 = vadd.f32 %v202_v32, %v37_v23  ;;  %287 = vst.msk [vmem:[#allocation2 + $0x40] sm:$0xff] %vm19_vm0, %v270_v29  ;;  %v271_v36 = vadd.f32 %v234_v34, %v45_v26 }
  0xea   :  { %282 = vst.msk [vmem:[#allocation2 + $0x18] sm:$0xff] %vm19_vm0, %v265_v31  ;;  %290 = vst.msk [vmem:[#allocation2 + $0x58] sm:$0xff] %vm19_vm0, %v273_v33 }
  0xeb   :  { %280 = vst.msk [vmem:[#allocation2 + $0x8] sm:$0xff] %vm19_vm0, %v263_v35  ;;  %288 = vst.msk [vmem:[#allocation2 + $0x48] sm:$0xff] %vm19_vm0, %v271_v36 }
  0xed   :  { %v585_v41 = vpop.f32.mrb[4].mxu0  ;;  %v593_v43 = vpop.f32.mrb[4].mxu1 }
  0xee   :  { %v268_v44 = vadd.f32 %v585_v41, %v42_v37  ;;  %v215_v45 = vpop.f32.mrb[5].mxu0  ;;  %v276_v47 = vadd.f32 %v593_v43, %v50_v38  ;;  %v247_v48 = vpop.f32.mrb[5].mxu1 }
  0xef   :  { %v731_v49 = vld [vmem:[#allocation2 + $0x10] sm:$0xff]  ;;  %v266_v50 = vadd.f32 %v215_v45, %v40_v39  ;;  %v586_v51 = vpop.f32.mrb[6].mxu0  ;;  %v274_v52 = vadd.f32 %v247_v48, %v48_v40  ;;  %v594_v54 = vpop.f32.mrb[6].mxu1 }
  0xf0   :  { %v545_v56 = vpack.c.bf16 %v731_v49, %v731_v49  ;;  %v298_v57 = vld [vmem:[#allocation2] sm:$0xff]  ;;  %285 = vst.msk [vmem:[#allocation2 + $0x30] sm:$0xff] %vm19_vm0, %v268_v44  ;;  %v269_v58 = vadd.f32 %v586_v51, %v43_v42  ;;  %v218_v59 = vpop.f32.mrb[7].mxu0  ;;  %293 = vst.msk [vmem:[#allocation2 + $0x70] sm:$0xff] %vm19_vm0, %v276_v47  ;;  %v250_v60 = vpop.f32.mrb[7].mxu1  ;;  %v743_v1 = vld [vmem:[#allocation2 + $0x50] sm:$0xff]  ;;  %v277_v4 = vadd.f32 %v594_v54, %v51_v53 }
  0xf1   :  { %v543_v61 = vpack.c.bf16 %v298_v57, %v298_v57  ;;  %v737_v62 = vld [vmem:[#allocation2 + $0x18] sm:$0xff]  ;;  %283 = vst.msk [vmem:[#allocation2 + $0x20] sm:$0xff] %vm19_vm0, %v266_v50  ;;  %v267_v63 = vadd.f32 %v218_v59, %v41_v46  ;;  %291 = vst.msk [vmem:[#allocation2 + $0x60] sm:$0xff] %vm19_vm0, %v274_v52  ;;  %v741_v0 = vld [vmem:[#allocation2 + $0x40] sm:$0xff]  ;;  %v275_v5 = vadd.f32 %v250_v60, %v49_v55  ;;  %v395_v8 = vsel %vm19_vm0, %v298_v57, 0.0 }
  0xf2   :  { %381 = vst.msk [vmem:[%s919_s2 + $0x8] sm:$0xf] %vm378_vm2, %v545_v56  ;;  %v546_v2 = vpack.c.bf16 %v737_v62, %v737_v62  ;;  %v299_v3 = vld [vmem:[#allocation2 + $0x8] sm:$0xff]  ;;  %v754_v7 = vld [vmem:[#allocation2 + $0x58] sm:$0xff]  ;;  %v551_v12 = vpack.c.bf16 %v741_v0, %v741_v0  ;;  %v553_v14 = vpack.c.bf16 %v743_v1, %v743_v1  ;;  %v398_v15 = vsel %vm19_vm0, %v731_v49, 0.0 }
  0xf3   :  { %286 = vst.msk [vmem:[#allocation2 + $0x38] sm:$0xff] %vm19_vm0, %v269_v58  ;;  %v752_v6 = vld [vmem:[#allocation2 + $0x48] sm:$0xff]  ;;  %v544_v9 = vpack.c.bf16 %v299_v3, %v299_v3  ;;  %v396_v10 = vsel %vm19_vm0, %v299_v3, 0.0  ;;  %284 = vst.msk [vmem:[#allocation2 + $0x28] sm:$0xff] %vm19_vm0, %v267_v63  ;;  %v554_v16 = vpack.c.bf16 %v754_v7, %v754_v7  ;;  %v400_v20 = vsel %vm19_vm0, %v737_v62, 0.0 }
  0xf4   :  { %379 = vst.msk [vmem:[%s919_s2] sm:$0xf] %vm378_vm2, %v543_v61  ;;  %382 = vst.msk [vmem:[%s919_s2 + $0xc] sm:$0xf] %vm378_vm2, %v546_v2  ;;  %v397_v11 = vadd.f32 %v396_v10, %v395_v8  ;;  %v552_v13 = vpack.c.bf16 %v752_v6, %v752_v6  ;;  %v433_v21 = vmul.f32 %v299_v3, %v299_v3  ;;  %v410_v50 = vsel %vm19_vm0, %v741_v0, 0.0 }
  0xf5   :  { %294 = vst.msk [vmem:[#allocation2 + $0x78] sm:$0xff] %vm19_vm0, %v277_v4  ;;  %292 = vst.msk [vmem:[#allocation2 + $0x68] sm:$0xff] %vm19_vm0, %v275_v5  ;;  %v432_v31 = vmul.f32 %v298_v57, %v298_v57  ;;  %v434_v35 = vmul.f32 %v731_v49, %v731_v49  ;;  %v435_v46 = vmul.f32 %v737_v62, %v737_v62  ;;  %v412_v59 = vsel %vm19_vm0, %v752_v6, 0.0 }
  0xf6   :  { %380 = vst.msk [vmem:[%s919_s2 + $0x4] sm:$0xf] %vm378_vm2, %v544_v9  ;;  %387 = vst.msk [vmem:[%s919_s2 + $0x20] sm:$0xf] %vm378_vm2, %v551_v12  ;;  %v399_v17 = vadd.f32 %v398_v15, %v397_v11  ;;  %v449_v40 = vsel %vm19_vm0, %v433_v21, 0.0  ;;  %v414_v2 = vsel %vm19_vm0, %v743_v1, 0.0  ;;  %v440_v8 = vmul.f32 %v741_v0, %v741_v0 }
  0xf7   :  { %388 = vst.msk [vmem:[%s919_s2 + $0x24] sm:$0xf] %vm378_vm2, %v552_v13  ;;  %389 = vst.msk [vmem:[%s919_s2 + $0x28] sm:$0xf] %vm378_vm2, %v553_v14  ;;  %v304_v18 = vld [vmem:[#allocation2 + $0x30] sm:$0xff]  ;;  %v448_v45 = vsel %vm19_vm0, %v432_v31, 0.0 }
  0xf8   :  { %v795_v19 = vld [vmem:[#allocation2 + $0x70] sm:$0xff]  ;;  %390 = vst.msk [vmem:[%s919_s2 + $0x2c] sm:$0xf] %vm378_vm2, %v554_v16  ;;  %v302_v22 = vld [vmem:[#allocation2 + $0x20] sm:$0xff]  ;;  %v549_v24 = vpack.c.bf16 %v304_v18, %v304_v18  ;;  %v401_v26 = vadd.f32 %v400_v20, %v399_v17  ;;  %v406_v44 = vsel %vm19_vm0, %v304_v18, 0.0  ;;  %v450_v51 = vadd.f32 %v449_v40, %v448_v45 }
  0xf9   :  { %v803_v23 = vld [vmem:[#allocation2 + $0x60] sm:$0xff]  ;;  %v557_v25 = vpack.c.bf16 %v795_v19, %v795_v19  ;;  %v547_v27 = vpack.c.bf16 %v302_v22, %v302_v22  ;;  %v402_v30 = vsel %vm19_vm0, %v302_v22, 0.0  ;;  %v436_v48 = vmul.f32 %v302_v22, %v302_v22 }
  0xfa   :  { %v305_v28 = vld [vmem:[#allocation2 + $0x38] sm:$0xff]  ;;  %v555_v29 = vpack.c.bf16 %v803_v23, %v803_v23  ;;  %v303_v32 = vld [vmem:[#allocation2 + $0x28] sm:$0xff]  ;;  %385 = vst.msk [vmem:[%s919_s2 + $0x18] sm:$0xf] %vm378_vm2, %v549_v24  ;;  %v403_v34 = vadd.f32 %v402_v30, %v401_v26  ;;  %v451_v54 = vsel %vm19_vm0, %v434_v35, 0.0  ;;  %v453_v57 = vsel %vm19_vm0, %v435_v46, 0.0 }
  0xfb   :  { %v550_v33 = vpack.c.bf16 %v305_v28, %v305_v28  ;;  %393 = vst.msk [vmem:[%s919_s2 + $0x38] sm:$0xf] %vm378_vm2, %v557_v25  ;;  %383 = vst.msk [vmem:[%s919_s2 + $0x10] sm:$0xf] %vm378_vm2, %v547_v27  ;;  %v548_v38 = vpack.c.bf16 %v303_v32, %v303_v32  ;;  %v404_v39 = vsel %vm19_vm0, %v303_v32, 0.0  ;;  %v408_v49 = vsel %vm19_vm0, %v305_v28, 0.0 }
  0xfc   :  { %v824_v36 = vld [vmem:[#allocation2 + $0x68] sm:$0xff]  ;;  %v826_v37 = vld [vmem:[#allocation2 + $0x78] sm:$0xff]  ;;  %391 = vst.msk [vmem:[%s919_s2 + $0x30] sm:$0xf] %vm378_vm2, %v555_v29  ;;  %v405_v43 = vadd.f32 %v404_v39, %v403_v34  ;;  %v437_v53 = vmul.f32 %v303_v32, %v303_v32  ;;  %v452_v55 = vadd.f32 %v451_v54, %v450_v51  ;;  %v455_v58 = vsel %vm19_vm0, %v436_v48, 0.0 }
  0xfd   :  { %v556_v41 = vpack.c.bf16 %v824_v36, %v824_v36  ;;  %v558_v42 = vpack.c.bf16 %v826_v37, %v826_v37  ;;  %386 = vst.msk [vmem:[%s919_s2 + $0x1c] sm:$0xf] %vm378_vm2, %v550_v33  ;;  %384 = vst.msk [vmem:[%s919_s2 + $0x14] sm:$0xf] %vm378_vm2, %v548_v38  ;;  %v438_v62 = vmul.f32 %v304_v18, %v304_v18  ;;  %v416_v9 = vsel %vm19_vm0, %v754_v7, 0.0 }
  0xfe   :  { %v407_v47 = vadd.f32 %v406_v44, %v405_v43  ;;  %v454_v60 = vadd.f32 %v453_v57, %v452_v55  ;;  %v457_v63 = vsel %vm19_vm0, %v437_v53, 0.0  ;;  %v439_v5 = vmul.f32 %v305_v28, %v305_v28 }
  0xff   :  { %392 = vst.msk [vmem:[%s919_s2 + $0x34] sm:$0xf] %vm378_vm2, %v556_v41  ;;  %394 = vst.msk [vmem:[%s919_s2 + $0x3c] sm:$0xf] %vm378_vm2, %v558_v42  ;;  %v418_v10 = vsel %vm19_vm0, %v803_v23, 0.0  ;;  %v459_v13 = vsel %vm19_vm0, %v438_v62, 0.0  ;;  %v441_v16 = vmul.f32 %v752_v6, %v752_v6  ;;  %v442_v22 = vmul.f32 %v743_v1, %v743_v1 }
 0x100   :  { %v409_v52 = vadd.f32 %v408_v49, %v407_v47  ;;  %v456_v3 = vadd.f32 %v455_v58, %v454_v60  ;;  %v461_v17 = vsel %vm19_vm0, %v439_v5, 0.0  ;;  %v463_v18 = vsel %vm19_vm0, %v440_v8, 0.0  ;;  %s642_s2 = smov [#allocation3]  }
 0x101   :  { %v420_v0 = vsel %vm19_vm0, %v824_v36, 0.0  ;;  %v422_v24 = vsel %vm19_vm0, %v795_v19, 0.0  ;;  %v443_v6 = vmul.f32 %v754_v7, %v754_v7  ;;  %v444_v27 = vmul.f32 %v803_v23, %v803_v23  ;;  %s497_s10 = sshll.u32 %s642_s2, 4  ;;  %s498_s10 = int_to_ptr.vmem [resolvable:$true] %s497_s10 }
 0x102   :  { %v411_v56 = vadd.f32 %v410_v50, %v409_v52  ;;  %v458_v11 = vadd.f32 %v457_v63, %v456_v3  ;;  %v465_v28 = vsel %vm19_vm0, %v441_v16, 0.0  ;;  %v424_v29 = vsel %vm19_vm0, %v826_v37, 0.0  ;;  %s617_s11 = scalar_lea.vmem %s498_s10, 32  ;;  %p622_p1 = scmp.lt.s32.totalorder %s498_s10, %s498_s10 }
 0x103   :  { %v467_v1 = vsel %vm19_vm0, %v442_v22, 0.0  ;;  %v445_v33 = vmul.f32 %v824_v36, %v824_v36  ;;  %v469_v34 = vsel %vm19_vm0, %v443_v6, 0.0  ;;  %v471_v7 = vsel %vm19_vm0, %v444_v27, 0.0  ;;  %p618_p0 = scmp.ne.s32.totalorder %s498_s10, %s617_s11  ;;  %p623_p2 = scmp.lt.s32.totalorder %s617_s11, %s617_s11 }
 0x104   :  { %v413_v61 = vadd.f32 %v412_v59, %v411_v56  ;;  %v460_v14 = vadd.f32 %v459_v13, %v458_v11  ;;  %v446_v23 = vmul.f32 %v795_v19, %v795_v19  ;;  %v447_v40 = vmul.f32 %v826_v37, %v826_v37 }
 0x105   :  { %v473_v41 = vsel %vm19_vm0, %v445_v33, 0.0  ;;  %p624_p3 = por %p623_p2, %p622_p1 }
 0x106   :  { %v415_v4 = vadd.f32 %v414_v2, %v413_v61  ;;  %v462_v20 = vadd.f32 %v461_v17, %v460_v14  ;;  %v475_v44 = vsel %vm19_vm0, %v446_v23, 0.0  ;;  %v477_v45 = vsel %vm19_vm0, %v447_v40, 0.0 }
 0x107   :  { %p625_p4 = pnand %p624_p3, %p618_p0 }
 0x108   :  { %v417_v12 = vadd.f32 %v416_v9, %v415_v4  ;;  %v464_v25 = vadd.f32 %v463_v18, %v462_v20 }
 0x10a   :  { %v419_v15 = vadd.f32 %v418_v10, %v417_v12  ;;  %v466_v30 = vadd.f32 %v465_v28, %v464_v25 }
 0x10c   :  { %v421_v21 = vadd.f32 %v420_v0, %v419_v15  ;;  %v468_v32 = vadd.f32 %v467_v1, %v466_v30 }
 0x10e   :  { %v423_v26 = vadd.f32 %v422_v24, %v421_v21  ;;  %v470_v38 = vadd.f32 %v469_v34, %v468_v32 }
 0x110   :  { %v425_v31 = vadd.f32 %v424_v29, %v423_v26  ;;  %v472_v39 = vadd.f32 %v471_v7, %v470_v38 }
 0x112   :  { %v426_v35 = vrot.slane %v425_v31, 4  ;;  %v474_v43 = vadd.f32 %v473_v41, %v472_v39 }
 0x114   :  { %v427_v42 = vadd.f32 %v426_v35, %v425_v31  ;;  %v476_v36 = vadd.f32 %v475_v44, %v474_v43 }
 0x116   :  { %v428_v46 = vrot.slane %v427_v42, 2  ;;  %v478_v47 = vadd.f32 %v477_v45, %v476_v36 }
 0x118   :  { %v479_v48 = vrot.slane %v478_v47, 4  ;;  %v429_v49 = vadd.f32 %v428_v46, %v427_v42 }
 0x11a   :  { %v480_v50 = vadd.f32 %v479_v48, %v478_v47  ;;  %v430_v19 = vrot.slane %v429_v49, 1 }
 0x11c   :  { %v481_v51 = vrot.slane %v480_v50, 2  ;;  %v431_v37 = vadd.f32 %v430_v19, %v429_v49 }
 0x11e   :  { %v482_v52 = vadd.f32 %v481_v51, %v480_v50 }
 0x120   :  { %v483_v53 = vrot.slane %v482_v52, 1 }
 0x122   :  { %v484_v54 = vadd.f32 %v483_v53, %v482_v52 }
 0x124   :  { %v486_v55 = vsel %vm485_vm3, %v431_v37, %v484_v54 }
 0x125   :  { %488 = vst.msk [vmem:[#allocation3] sm:$0x3] %vm487_vm4, %v486_v55 }
 0x126   :  { %628 = shalt.err (!%p625_p4)
}
 0x127   :  { %s629_s14 = scalar_lea.hbm %s920_s3, 32 }
 0x128   :  { %p630_p5 = scmp.ne.s32.totalorder %s920_s3, %s629_s14  ;;  %p633_p6 = scmp.lt.u32.totalorder %s629_s14, %s920_s3 }
 0x12a   :  { %p635_p7 = pnand %p633_p6, %p630_p5 }
 0x12c   :  { %638 = shalt.err (!%p635_p7)
}
 0x12d   :  { %500 = dma.vmem_to_hbm [thread:$0]  %s498_s10, 32, %s920_s3, [#allocation4]  }
 0x12e   :  { %639 = dma.done.wait [#allocation4], 32  }
 0x12f   :  { %640 = vsyncadd [#allocation4], 4294967264 }
 0x130   :  { %506 = vsyncpa [#allocation4], 1 }

</bundles_post_ra>
